<compile_context>
chip_gen: v7x
topology: tpu7x:2x2x1
jax: 0.10.0
libtpu: 0.0.40
codegen_flags: <defaults>
</compile_context>

<pallas_src>
import jax
import jax.numpy as jnp
from jax.experimental import pallas as pl
from jax.experimental.pallas import tpu as pltpu

IN_FEATURES = 28 * 28   # 784
K_PAD = 896             # 7 * 128  (lane-clean K for layer 1)
H1 = 256
H2 = 128
N_CLASSES = 10
N_PAD = 128             # lane-dense output width
NEG_BIG = -1e30         # padding bias so padded logits don't perturb max / LSE


def _round_up(n, m):
    return (n + m - 1) // m * m


def mlp_kernel(x_ref, w1_ref, b1_ref, w2_ref, b2_ref, w3_ref, b3_ref, o_ref):
    # layer 1: Linear(784->256) + ReLU   (bf16 MXU, f32 accumulate/elementwise)
    h1 = jnp.dot(x_ref[...], w1_ref[...], preferred_element_type=jnp.float32)
    h1 = jnp.maximum(h1 + b1_ref[...], 0.0)

    # layer 2: Linear(256->128) -> phi, then ReLU
    phi = jnp.dot(h1.astype(jnp.bfloat16), w2_ref[...],
                  preferred_element_type=jnp.float32)
    h2 = jnp.maximum(phi + b2_ref[...], 0.0)

    # layer 3: Linear(128->128-padded logits) + LogSoftmax
    # padded weight columns are zero and padded biases are -1e30, so the padded
    # lanes contribute nothing to the row max or the log-sum-exp.
    logits = jnp.dot(h2.astype(jnp.bfloat16), w3_ref[...],
                     preferred_element_type=jnp.float32) + b3_ref[...]
    m = jnp.max(logits, axis=-1, keepdims=True)
    shifted = logits - m
    lse = jnp.log(jnp.sum(jnp.exp(shifted), axis=-1, keepdims=True))
    o_ref[...] = shifted - lse


def mlp_forward(x_nchw, params, *, tb=512):
    """Forward pass of Model: returns log-softmax logits of shape (B, 10)."""
    w1, b1, w2, b2, w3, b3 = params
    B = x_nchw.shape[0]
    x = x_nchw.reshape(B, IN_FEATURES).astype(jnp.float32)

    # batch tile: multiple of 8 sublanes, capped by the requested tile size.
    TB = min(_round_up(tb, 8), _round_up(B, 8))
    B_pad = _round_up(B, TB)

    # pad batch + K, cast MXU operands to bf16 once (f32 accumulation in kernel).
    x_p = jnp.zeros((B_pad, K_PAD), jnp.float32).at[:B, :IN_FEATURES].set(x)
    x_p = x_p.astype(jnp.bfloat16)
    w1_p = (jnp.zeros((K_PAD, H1), jnp.float32).at[:IN_FEATURES, :].set(w1)
            .astype(jnp.bfloat16))
    w2_b = w2.astype(jnp.bfloat16)
    w3_p = (jnp.zeros((H2, N_PAD), jnp.float32).at[:, :N_CLASSES].set(w3)
            .astype(jnp.bfloat16))
    b3_p = jnp.full((1, N_PAD), NEG_BIG, jnp.float32).at[:, :N_CLASSES].set(b3)

    grid = (B_pad // TB,)
    out = pl.pallas_call(
        mlp_kernel,
        out_shape=jax.ShapeDtypeStruct((B_pad, N_PAD), jnp.float32),
        grid=grid,
        in_specs=[
            pl.BlockSpec((TB, K_PAD), lambda i: (i, 0)),    # x tile (pipelined)
            pl.BlockSpec((K_PAD, H1), lambda i: (0, 0)),    # w1 (resident)
            pl.BlockSpec((1, H1),     lambda i: (0, 0)),    # b1
            pl.BlockSpec((H1, H2),    lambda i: (0, 0)),    # w2
            pl.BlockSpec((1, H2),     lambda i: (0, 0)),    # b2
            pl.BlockSpec((H2, N_PAD), lambda i: (0, 0)),    # w3 (lane-padded)
            pl.BlockSpec((1, N_PAD),  lambda i: (0, 0)),    # b3 (lane-padded)
        ],
        out_specs=pl.BlockSpec((TB, N_PAD), lambda i: (i, 0)),
        compiler_params=pltpu.CompilerParams(
            dimension_semantics=("parallel",),
        ),
    )(x_p, w1_p, b1, w2_b, b2, w3_p, b3_p)

    return out[:B, :N_CLASSES]


def init_params(key):
    """Deterministic init matching nn.Linear shapes (weights stored transposed)."""
    k1, k2, k3, k4, k5, k6 = jax.random.split(key, 6)

    def linear(kw, kb, fan_in, fan_out):
        bound = 1.0 / jnp.sqrt(fan_in)
        w = jax.random.uniform(kw, (fan_in, fan_out), jnp.float32, -bound, bound)
        b = jax.random.uniform(kb, (1, fan_out), jnp.float32, -bound, bound)
        return w, b

    w1, b1 = linear(k1, k2, IN_FEATURES, H1)
    w2, b2 = linear(k3, k4, H1, H2)
    w3, b3 = linear(k5, k6, H2, N_CLASSES)
    return (w1, b1, w2, b2, w3, b3)


def mlp_reference(x_nchw, params):
    w1, b1, w2, b2, w3, b3 = params
    x = x_nchw.reshape(x_nchw.shape[0], IN_FEATURES).astype(jnp.float32)
    h1 = jnp.maximum(x @ w1 + b1, 0.0)
    phi = h1 @ w2 + b2
    h2 = jnp.maximum(phi, 0.0)
    logits = h2 @ w3 + b3
    return jax.nn.log_softmax(logits, axis=1)


if __name__ == "__main__":
    key = jax.random.PRNGKey(0)
    kx, kx2, kp = jax.random.split(key, 3)
    params = init_params(kp)

    # small batch of MNIST-shaped inputs (NCHW, like the PyTorch module expects)
    x = jax.random.normal(kx, (4, 1, 28, 28), dtype=jnp.float32)
    out = jax.block_until_ready(mlp_forward(x, params))
    ref = mlp_reference(x, params)
    assert out.shape == (4, 10)
    assert jnp.allclose(out, ref, atol=5e-2, rtol=5e-2)

    # exercise the batch grid / pipelining path (multiple tiles + batch padding)
    x2 = jax.random.normal(kx2, (200, 1, 28, 28), dtype=jnp.float32)
    out2 = jax.block_until_ready(mlp_forward(x2, params, tb=64))
    ref2 = mlp_reference(x2, params)
    assert out2.shape == (200, 10)
    assert jnp.allclose(out2, ref2, atol=5e-2, rtol=5e-2)

    print("KERNEL_OK")
</pallas_src>

<mosaic_0001>
module attributes {stable_mosaic.version = 11 : i64} {
  func.func @mlp_kernel(%arg0: i32, %arg1: memref<8x896xbf16, #tpu.memory_space<vmem>>, %arg2: memref<896x256xbf16, #tpu.memory_space<vmem>>, %arg3: memref<1x256xf32, #tpu.memory_space<vmem>>, %arg4: memref<256x128xbf16, #tpu.memory_space<vmem>>, %arg5: memref<1x128xf32, #tpu.memory_space<vmem>>, %arg6: memref<128x128xbf16, #tpu.memory_space<vmem>>, %arg7: memref<1x128xf32, #tpu.memory_space<vmem>>, %arg8: memref<8x128xf32, #tpu.memory_space<vmem>>) attributes {dimension_semantics = [#tpu.dimension_semantics<parallel>], iteration_bounds = array<i64: 1>, scalar_prefetch = 0 : i64, scratch_operands = 0 : i64, tpu.core_type = #tpu.core_type<tc>, window_params = [{transform_indices = @transform_0, window_bounds = array<i64: 8, 896>}, {pipeline_mode = #tpu.pipeline_mode<synchronous>, transform_indices = @transform_1, window_bounds = array<i64: 896, 256>}, {pipeline_mode = #tpu.pipeline_mode<synchronous>, transform_indices = @transform_2, window_bounds = array<i64: 1, 256>}, {pipeline_mode = #tpu.pipeline_mode<synchronous>, transform_indices = @transform_3, window_bounds = array<i64: 256, 128>}, {pipeline_mode = #tpu.pipeline_mode<synchronous>, transform_indices = @transform_4, window_bounds = array<i64: 1, 128>}, {pipeline_mode = #tpu.pipeline_mode<synchronous>, transform_indices = @transform_5, window_bounds = array<i64: 128, 128>}, {pipeline_mode = #tpu.pipeline_mode<synchronous>, transform_indices = @transform_6, window_bounds = array<i64: 1, 128>}, {transform_indices = @transform_7, window_bounds = array<i64: 8, 128>}]} {
    %c0 = arith.constant 0 : index
    %c0_0 = arith.constant 0 : index
    %0 = vector.load %arg1[%c0, %c0_0] : memref<8x896xbf16, #tpu.memory_space<vmem>>, vector<8x896xbf16>
    %c0_1 = arith.constant 0 : index
    %c0_2 = arith.constant 0 : index
    %1 = vector.load %arg2[%c0_1, %c0_2] : memref<896x256xbf16, #tpu.memory_space<vmem>>, vector<896x256xbf16>
    %cst = arith.constant dense<0.000000e+00> : vector<8x256xf32>
    %2 = tpu.matmul %0, %1, %cst {dimension_numbers = #tpu.dot_dimension_numbers<[1], [0], [0], [1], [0, 0, 1, 1], [], []>} : vector<8x896xbf16>, vector<896x256xbf16>, vector<8x256xf32> -> vector<8x256xf32>
    %c0_3 = arith.constant 0 : index
    %c0_4 = arith.constant 0 : index
    %3 = vector.load %arg3[%c0_3, %c0_4] : memref<1x256xf32, #tpu.memory_space<vmem>>, vector<1x256xf32>
    %4 = vector.broadcast %3 : vector<1x256xf32> to vector<8x256xf32>
    %5 = arith.addf %2, %4 : vector<8x256xf32>
    %cst_5 = arith.constant 0.000000e+00 : f32
    %6 = vector.broadcast %cst_5 : f32 to vector<8x256xf32>
    %7 = arith.maximumf %5, %6 : vector<8x256xf32>
    %8 = arith.truncf %7 : vector<8x256xf32> to vector<8x256xbf16>
    %c0_6 = arith.constant 0 : index
    %c0_7 = arith.constant 0 : index
    %9 = vector.load %arg4[%c0_6, %c0_7] : memref<256x128xbf16, #tpu.memory_space<vmem>>, vector<256x128xbf16>
    %cst_8 = arith.constant dense<0.000000e+00> : vector<8x128xf32>
    %10 = tpu.matmul %8, %9, %cst_8 {dimension_numbers = #tpu.dot_dimension_numbers<[1], [0], [0], [1], [0, 0, 1, 1], [], []>} : vector<8x256xbf16>, vector<256x128xbf16>, vector<8x128xf32> -> vector<8x128xf32>
    %c0_9 = arith.constant 0 : index
    %c0_10 = arith.constant 0 : index
    %11 = vector.load %arg5[%c0_9, %c0_10] : memref<1x128xf32, #tpu.memory_space<vmem>>, vector<1x128xf32>
    %12 = vector.broadcast %11 : vector<1x128xf32> to vector<8x128xf32>
    %13 = arith.addf %10, %12 : vector<8x128xf32>
    %cst_11 = arith.constant 0.000000e+00 : f32
    %14 = vector.broadcast %cst_11 : f32 to vector<8x128xf32>
    %15 = arith.maximumf %13, %14 : vector<8x128xf32>
    %16 = arith.truncf %15 : vector<8x128xf32> to vector<8x128xbf16>
    %c0_12 = arith.constant 0 : index
    %c0_13 = arith.constant 0 : index
    %17 = vector.load %arg6[%c0_12, %c0_13] : memref<128x128xbf16, #tpu.memory_space<vmem>>, vector<128x128xbf16>
    %cst_14 = arith.constant dense<0.000000e+00> : vector<8x128xf32>
    %18 = tpu.matmul %16, %17, %cst_14 {dimension_numbers = #tpu.dot_dimension_numbers<[1], [0], [0], [1], [0, 0, 1, 1], [], []>} : vector<8x128xbf16>, vector<128x128xbf16>, vector<8x128xf32> -> vector<8x128xf32>
    %c0_15 = arith.constant 0 : index
    %c0_16 = arith.constant 0 : index
    %19 = vector.load %arg7[%c0_15, %c0_16] : memref<1x128xf32, #tpu.memory_space<vmem>>, vector<1x128xf32>
    %20 = vector.broadcast %19 : vector<1x128xf32> to vector<8x128xf32>
    %21 = arith.addf %18, %20 : vector<8x128xf32>
    %cst_17 = arith.constant dense<0xFF800000> : vector<8xf32>
    %22 = vector.multi_reduction <maximumf>, %21, %cst_17 [1] : vector<8x128xf32> to vector<8xf32>
    %23 = vector.shape_cast %22 : vector<8xf32> to vector<8x1xf32>
    %24 = vector.broadcast %23 : vector<8x1xf32> to vector<8x128xf32>
    %25 = arith.subf %21, %24 : vector<8x128xf32>
    %26 = math.exp %25 : vector<8x128xf32>
    %cst_18 = arith.constant dense<0.000000e+00> : vector<8xf32>
    %27 = vector.multi_reduction <add>, %26, %cst_18 [1] : vector<8x128xf32> to vector<8xf32>
    %28 = vector.shape_cast %27 : vector<8xf32> to vector<8x1xf32>
    %29 = math.log %28 : vector<8x1xf32>
    %30 = vector.broadcast %29 : vector<8x1xf32> to vector<8x128xf32>
    %31 = arith.subf %25, %30 : vector<8x128xf32>
    %c0_19 = arith.constant 0 : index
    %c0_20 = arith.constant 0 : index
    %32 = vector.load %arg8[%c0_19, %c0_20] : memref<8x128xf32, #tpu.memory_space<vmem>>, vector<8x128xf32>
    tpu.vector_store %arg8[%c0_19, %c0_20], %31 {strides = array<i32>} : memref<8x128xf32, #tpu.memory_space<vmem>>, vector<8x128xf32>,
    return
  }
  func.func @transform_0(%arg0: i32) -> (i32, i32) {
    %c0_i32 = arith.constant 0 : i32
    %c0_i32_0 = arith.constant 0 : i32
    return %arg0, %c0_i32 : i32, i32
  }
  func.func @transform_1(%arg0: i32) -> (i32, i32) {
    %c0_i32 = arith.constant 0 : i32
    %c0_i32_0 = arith.constant 0 : i32
    %c0_i32_1 = arith.constant 0 : i32
    return %c0_i32, %c0_i32_0 : i32, i32
  }
  func.func @transform_2(%arg0: i32) -> (i32, i32) {
    %c0_i32 = arith.constant 0 : i32
    %c0_i32_0 = arith.constant 0 : i32
    %c0_i32_1 = arith.constant 0 : i32
    return %c0_i32, %c0_i32_0 : i32, i32
  }
  func.func @transform_3(%arg0: i32) -> (i32, i32) {
    %c0_i32 = arith.constant 0 : i32
    %c0_i32_0 = arith.constant 0 : i32
    %c0_i32_1 = arith.constant 0 : i32
    return %c0_i32, %c0_i32_0 : i32, i32
  }
  func.func @transform_4(%arg0: i32) -> (i32, i32) {
    %c0_i32 = arith.constant 0 : i32
    %c0_i32_0 = arith.constant 0 : i32
    %c0_i32_1 = arith.constant 0 : i32
    return %c0_i32, %c0_i32_0 : i32, i32
  }
  func.func @transform_5(%arg0: i32) -> (i32, i32) {
    %c0_i32 = arith.constant 0 : i32
    %c0_i32_0 = arith.constant 0 : i32
    %c0_i32_1 = arith.constant 0 : i32
    return %c0_i32, %c0_i32_0 : i32, i32
  }
  func.func @transform_6(%arg0: i32) -> (i32, i32) {
    %c0_i32 = arith.constant 0 : i32
    %c0_i32_0 = arith.constant 0 : i32
    %c0_i32_1 = arith.constant 0 : i32
    return %c0_i32, %c0_i32_0 : i32, i32
  }
  func.func @transform_7(%arg0: i32) -> (i32, i32) {
    %c0_i32 = arith.constant 0 : i32
    %c0_i32_0 = arith.constant 0 : i32
    return %arg0, %c0_i32 : i32, i32
  }
}

</mosaic_0001>

<bundles_post_ra>
// kernel: tpu_custom_call.1
= control target key start
LH: loop header
LB: loop body
LE: loop exit
PB: predicated region body
PF: predicated region fallthrough
CT: control target
= control target key end

     0   :  { %12 = vsyncpa [#allocation3], 0  ;;  %s1952_s0 = inlined_call_operand.hbm [shape: bf16[8,896], index: 0, kind: input, shape index: {}]   ;;  %s1953_s1 = inlined_call_operand.hbm [shape: bf16[896,256], index: 1, kind: input, shape index: {}]   ;;  %s1954_s2 = inlined_call_operand.vmem [shape: f32[1,256], index: 2, kind: input, shape index: {}]   ;;  %s1955_s3 = inlined_call_operand.hbm [shape: bf16[256,128], index: 3, kind: input, shape index: {}]   ;;  %s1956_s4 = inlined_call_operand.vmem [shape: f32[1,128], index: 4, kind: input, shape index: {}]   ;;  %s1957_s5 = inlined_call_operand.hbm [shape: bf16[128,128], index: 5, kind: input, shape index: {}]   ;;  %s1958_s6 = inlined_call_operand.vmem [shape: f32[1,128], index: 6, kind: input, shape index: {}]   ;;  %s1959_s7 = inlined_call_operand.hbm [shape: f32[8,128], index: 7, kind: output, shape index: {}]  }
   0x1   :  { %13 = vsyncpa [#allocation6], 0 }
   0x2   :  { %14 = vsyncpa [#allocation9], 0 }
   0x3   :  { %15 = vsyncpa [#allocation4], 0  ;;  %s1819_s24 = smov [#allocation5]   ;;  %s1701_s28 = scalar_lea.hbm %s1953_s1, 14336 }
   0x4   :  { %s31_s25 = sshll.u32 %s1819_s24, 4  ;;  %p1702_p0 = scmp.ne.s32.totalorder %s1953_s1, %s1701_s28  ;;  %s32_s25 = int_to_ptr.vmem [resolvable:$true] %s31_s25 }
   0x5   :  { %p1705_p1 = scmp.lt.u32.totalorder %s1701_s28, %s1953_s1 }
   0x7   :  { %p1707_p2 = pnand %p1705_p1, %p1702_p0 }
   0x9   :  { %1710 = shalt.err (!%p1707_p2)
}
   0xa   :  { %s1711_s10 = scalar_lea.vmem %s32_s25, 14336  ;;  %p1716_p4 = scmp.lt.s32.totalorder %s32_s25, %s32_s25 }
   0xb   :  { %p1712_p3 = scmp.ne.s32.totalorder %s32_s25, %s1711_s10  ;;  %p1717_p5 = scmp.lt.s32.totalorder %s1711_s10, %s1711_s10 }
   0xd   :  { %p1718_p6 = por %p1717_p5, %p1716_p4 }
   0xf   :  { %p1719_p7 = pnand %p1718_p6, %p1712_p3 }
  0x11   :  { %1722 = shalt.err (!%p1719_p7)
}
  0x12   :  { %s1820_s11 = smov 128   ;;  %s1821_s12 = smov 8  }
  0x13   :  { %37 = dma.hbm_to_vmem [thread:$0]  %s1953_s1, 14336, %s32_s25, [#allocation6], %s1820_s11, %s1820_s11, %s1821_s12  }
  0x14   :  { %s1822_s15 = smov [#allocation2]   ;;  %s1823_s17 = smov [#allocation7]  }
  0x15   :  { %s22_s16 = sshll.u32 %s1822_s15, 4  ;;  %s45_s18 = sshll.u32 %s1823_s17, 4  ;;  %s23_s16 = int_to_ptr.vmem [resolvable:$true] %s22_s16  ;;  %s46_s18 = int_to_ptr.vmem [resolvable:$true] %s45_s18 }
  0x16   :  { %s1723_s21 = scalar_lea.hbm %s1952_s0, 448 }
  0x17   :  { %p1724_p8 = scmp.ne.s32.totalorder %s1952_s0, %s1723_s21  ;;  %p1727_p9 = scmp.lt.u32.totalorder %s1723_s21, %s1952_s0 }
  0x19   :  { %p1729_p10 = pnand %p1727_p9, %p1724_p8 }
  0x1b   :  { %1732 = shalt.err (!%p1729_p10)
}
  0x1c   :  { %s1733_s1 = scalar_lea.vmem %s23_s16, 448  ;;  %p1738_p12 = scmp.lt.s32.totalorder %s23_s16, %s23_s16 }
  0x1d   :  { %p1734_p11 = scmp.ne.s32.totalorder %s23_s16, %s1733_s1  ;;  %p1739_p13 = scmp.lt.s32.totalorder %s1733_s1, %s1733_s1 }
  0x1f   :  { %p1740_p0 = por %p1739_p13, %p1738_p12 }
  0x21   :  { %p1741_p1 = pnand %p1740_p0, %p1734_p11 }
  0x23   :  { %1744 = shalt.err (!%p1741_p1)
}
  0x24   :  { %25 = dma.hbm_to_vmem [thread:$0]  %s1952_s0, 448, %s23_s16, [#allocation3]  }
  0x25   :  { %s1745_s30 = scalar_lea.hbm %s1955_s3, 2048 }
  0x26   :  { %p1746_p2 = scmp.ne.s32.totalorder %s1955_s3, %s1745_s30  ;;  %p1749_p3 = scmp.lt.u32.totalorder %s1745_s30, %s1955_s3 }
  0x28   :  { %p1751_p4 = pnand %p1749_p3, %p1746_p2 }
  0x2a   :  { %1754 = shalt.err (!%p1751_p4)
}
  0x2b   :  { %s1755_s12 = scalar_lea.vmem %s46_s18, 2048  ;;  %p1760_p6 = scmp.lt.s32.totalorder %s46_s18, %s46_s18 }
  0x2c   :  { %p1756_p5 = scmp.ne.s32.totalorder %s46_s18, %s1755_s12  ;;  %p1761_p7 = scmp.lt.s32.totalorder %s1755_s12, %s1755_s12 }
  0x2e   :  { %p1762_p8 = por %p1761_p7, %p1760_p6 }
  0x30   :  { %p1763_p9 = pnand %p1762_p8, %p1756_p5 }
  0x32   :  { %1766 = shalt.err (!%p1763_p9)
}
  0x33   :  { %s1824_s0 = smov 64   ;;  %s1825_s13 = smov 4  }
  0x34   :  { %51 = dma.hbm_to_vmem [thread:$0]  %s1955_s3, 2048, %s46_s18, [#allocation6], %s1824_s0, %s1824_s0, %s1825_s13  }
  0x35   :  { %s1826_s16 = smov [#allocation8]   ;;  %s1767_s21 = scalar_lea.hbm %s1957_s5, 1024 }
  0x36   :  { %s59_s17 = sshll.u32 %s1826_s16, 4  ;;  %p1768_p10 = scmp.ne.s32.totalorder %s1957_s5, %s1767_s21  ;;  %s60_s17 = int_to_ptr.vmem [resolvable:$true] %s59_s17 }
  0x37   :  { %p1771_p11 = scmp.lt.u32.totalorder %s1767_s21, %s1957_s5 }
  0x39   :  { %p1773_p12 = pnand %p1771_p11, %p1768_p10 }
  0x3b   :  { %1776 = shalt.err (!%p1773_p12)
}
  0x3c   :  { %s1777_s1 = scalar_lea.vmem %s60_s17, 1024  ;;  %p1782_p0 = scmp.lt.s32.totalorder %s60_s17, %s60_s17 }
  0x3d   :  { %p1778_p13 = scmp.ne.s32.totalorder %s60_s17, %s1777_s1  ;;  %p1783_p1 = scmp.lt.s32.totalorder %s1777_s1, %s1777_s1 }
  0x3f   :  { %p1784_p2 = por %p1783_p1, %p1782_p0 }
  0x41   :  { %p1785_p3 = pnand %p1784_p2, %p1778_p13 }
  0x43   :  { %1788 = shalt.err (!%p1785_p3)
}
  0x44   :  { %65 = dma.hbm_to_vmem [thread:$0]  %s1957_s5, 1024, %s60_s17, [#allocation9], %s1824_s0, %s1824_s0, %s1825_s13  }
  0x45   :  { %1811 = dma.done.wait [#allocation3], 448  }
  0x46   :  { %1812 = vsyncadd [#allocation3], 4294966848 }
  0x47   :  { %1813 = dma.done.wait [#allocation6], 16384  }
  0x48   :  { %1814 = vsyncadd [#allocation6], 4294950912 }
  0x49   :  { %1815 = dma.done.wait [#allocation9], 1024  }
  0x4a   :  { %1816 = vsyncadd [#allocation9], 4294966272  ;;  %v1498_v0 = vld [vmem:[#allocation5 + $0x104] ss:$8 sps:$4 sm:$0xff]   ;;  %v1500_v1 = vld [vmem:[#allocation5 + $0x100] ss:$8 sps:$4 sm:$0xff]  }
  0x4b   :  { %835 = vmatprep.subr.bf16.mxu0 %v1498_v0  ;;  %v1501_v2 = vld [vmem:[#allocation5 + $0x114] ss:$8 sps:$4 sm:$0xff]   ;;  %v1503_v3 = vld [vmem:[#allocation5 + $0x110] ss:$8 sps:$4 sm:$0xff]   ;;  %v1504_v4 = vld [vmem:[#allocation5 + $0x124] ss:$8 sps:$4 sm:$0xff]  }
  0x4c   :  { %836 = vmatpush1.bf16.msra.mxu0 %v1500_v1  ;;  %v1506_v5 = vld [vmem:[#allocation5 + $0x120] ss:$8 sps:$4 sm:$0xff]   ;;  %v1507_v6 = vld [vmem:[#allocation5 + $0x134] ss:$8 sps:$4 sm:$0xff]   ;;  %v1509_v7 = vld [vmem:[#allocation5 + $0x130] ss:$8 sps:$4 sm:$0xff]  }
  0x4d   :  { %837 = vmatprep.subr.bf16.mxu0 %v1501_v2  ;;  %v1510_v8 = vld [vmem:[#allocation5 + $0x144] ss:$8 sps:$4 sm:$0xff]   ;;  %v1512_v9 = vld [vmem:[#allocation5 + $0x140] ss:$8 sps:$4 sm:$0xff]   ;;  %v1513_v10 = vld [vmem:[#allocation5 + $0x154] ss:$8 sps:$4 sm:$0xff]  }
  0x4e   :  { %v1515_v11 = vld [vmem:[#allocation5 + $0x150] ss:$8 sps:$4 sm:$0xff]   ;;  %v1516_v12 = vld [vmem:[#allocation5 + $0x164] ss:$8 sps:$4 sm:$0xff]   ;;  %v1518_v15 = vld [vmem:[#allocation5 + $0x160] ss:$8 sps:$4 sm:$0xff]  }
  0x4f   :  { %v1919_v13 = vld [vmem:[#allocation2 + $0x8] sm:$0xff]  ;;  %v1519_v16 = vld [vmem:[#allocation5 + $0x174] ss:$8 sps:$4 sm:$0xff]   ;;  %v1524_v19 = vld [vmem:[#allocation5 + $0x180] ss:$8 sps:$4 sm:$0xff]   ;;  %vm1829_vm0 = vmmov 0  }
  0x50   :  { %838 = vmatpush1.bf16.msra.mxu0 %v1503_v3  ;;  %v1281_v14 = vcombine.high %v1919_v13, %v1919_v13  ;;  %v1521_v17 = vld [vmem:[#allocation5 + $0x170] ss:$8 sps:$4 sm:$0xff]   ;;  %v1522_v18 = vld [vmem:[#allocation5 + $0x184] ss:$8 sps:$4 sm:$0xff]   ;;  %v1525_v20 = vld [vmem:[#allocation5 + $0x194] ss:$8 sps:$4 sm:$0xff]   ;;  %v1280_v54 = vcombine.low %v1919_v13, %v1919_v13 }
  0x51   :  { %839 = vmatprep.subr.bf16.mxu0 %v1504_v4  ;;  %v1569_v21 = vld [vmem:[#allocation5 + $0x4] ss:$8 sps:$4 sm:$0xff]   ;;  %v1571_v22 = vld [vmem:[#allocation5] ss:$8 sps:$4 sm:$0xff]   ;;  %v1575_v23 = vld [vmem:[#allocation5 + $0x14] ss:$8 sps:$4 sm:$0xff]  }
  0x52   :  { %867 = vmatprep.mubr.bf16.mxu0 %v1281_v14  ;;  %794 = vmatprep.subr.bf16.mxu1 %v1569_v21  ;;  %v1577_v24 = vld [vmem:[#allocation5 + $0x10] ss:$8 sps:$4 sm:$0xff]   ;;  %v1528_v26 = vld [vmem:[#allocation5 + $0x1a4] ss:$8 sps:$4 sm:$0xff]   ;;  %v1530_v28 = vld [vmem:[#allocation5 + $0x1a0] ss:$8 sps:$4 sm:$0xff]  }
  0x53   :  { %795 = vmatpush1.bf16.msra.mxu1 %v1571_v22  ;;  %v1527_v25 = vld [vmem:[#allocation5 + $0x190] ss:$8 sps:$4 sm:$0xff]   ;;  %v1581_v27 = vld [vmem:[#allocation5 + $0x24] ss:$8 sps:$4 sm:$0xff]   ;;  %v1583_v29 = vld [vmem:[#allocation5 + $0x20] ss:$8 sps:$4 sm:$0xff]  }
  0x54   :  { %840 = vmatpush1.bf16.msra.mxu0 %v1506_v5  ;;  %796 = vmatprep.subr.bf16.mxu1 %v1575_v23  ;;  %v1587_v30 = vld [vmem:[#allocation5 + $0x34] ss:$8 sps:$4 sm:$0xff]   ;;  %v1533_v32 = vld [vmem:[#allocation5 + $0x1b0] ss:$8 sps:$4 sm:$0xff]   ;;  %v1593_v34 = vld [vmem:[#allocation5 + $0x44] ss:$8 sps:$4 sm:$0xff]  }
  0x55   :  { %841 = vmatprep.subr.bf16.mxu0 %v1507_v6  ;;  %v1531_v31 = vld [vmem:[#allocation5 + $0x1b4] ss:$8 sps:$4 sm:$0xff]   ;;  %v1589_v33 = vld [vmem:[#allocation5 + $0x30] ss:$8 sps:$4 sm:$0xff]   ;;  %v1534_v35 = vld [vmem:[#allocation5 + $0x1c4] ss:$8 sps:$4 sm:$0xff]  }
  0x56   :  { %v1536_v36 = vld [vmem:[#allocation5 + $0x1c0] ss:$8 sps:$4 sm:$0xff]   ;;  %v1599_v38 = vld [vmem:[#allocation5 + $0x54] ss:$8 sps:$4 sm:$0xff]   ;;  %v1539_v40 = vld [vmem:[#allocation5 + $0x1d0] ss:$8 sps:$4 sm:$0xff]  }
  0x57   :  { %797 = vmatpush1.bf16.msra.mxu1 %v1577_v24  ;;  %v1595_v37 = vld [vmem:[#allocation5 + $0x40] ss:$8 sps:$4 sm:$0xff]   ;;  %v1537_v39 = vld [vmem:[#allocation5 + $0x1d4] ss:$8 sps:$4 sm:$0xff]   ;;  %v1601_v41 = vld [vmem:[#allocation5 + $0x50] ss:$8 sps:$4 sm:$0xff]  }
  0x58   :  { %842 = vmatpush1.bf16.msra.mxu0 %v1509_v7  ;;  %798 = vmatprep.subr.bf16.mxu1 %v1581_v27  ;;  %v1605_v42 = vld [vmem:[#allocation5 + $0x64] ss:$8 sps:$4 sm:$0xff]   ;;  %v1542_v44 = vld [vmem:[#allocation5 + $0x1e0] ss:$8 sps:$4 sm:$0xff]   ;;  %v1611_v46 = vld [vmem:[#allocation5 + $0x74] ss:$8 sps:$4 sm:$0xff]  }
  0x59   :  { %843 = vmatprep.subr.bf16.mxu0 %v1510_v8  ;;  %v1540_v43 = vld [vmem:[#allocation5 + $0x1e4] ss:$8 sps:$4 sm:$0xff]   ;;  %v1607_v45 = vld [vmem:[#allocation5 + $0x60] ss:$8 sps:$4 sm:$0xff]   ;;  %v1543_v47 = vld [vmem:[#allocation5 + $0x1f4] ss:$8 sps:$4 sm:$0xff]  }
  0x5a   :  { %v1545_v48 = vld [vmem:[#allocation5 + $0x1f0] ss:$8 sps:$4 sm:$0xff]   ;;  %v1617_v50 = vld [vmem:[#allocation5 + $0x84] ss:$8 sps:$4 sm:$0xff]   ;;  %v1548_v52 = vld [vmem:[#allocation5 + $0x200] ss:$8 sps:$4 sm:$0xff]  }
  0x5b   :  { %799 = vmatpush1.bf16.msra.mxu1 %v1583_v29  ;;  %v1613_v49 = vld [vmem:[#allocation5 + $0x70] ss:$8 sps:$4 sm:$0xff]   ;;  %v1550_v51 = vld [vmem:[#allocation5 + $0x204] ss:$8 sps:$4 sm:$0xff]   ;;  %v1619_v55 = vld [vmem:[#allocation5 + $0x80] ss:$8 sps:$4 sm:$0xff]  }
  0x5c   :  { %844 = vmatpush1.bf16.msra.mxu0 %v1512_v9  ;;  %800 = vmatprep.subr.bf16.mxu1 %v1587_v30  ;;  %v1923_v53 = vld [vmem:[#allocation2 + $0x10] sm:$0xff]  ;;  %v1631_v61 = vld [vmem:[#allocation5 + $0xa4] ss:$8 sps:$4 sm:$0xff]   ;;  %v1554_v63 = vld [vmem:[#allocation5 + $0x220] ss:$8 sps:$4 sm:$0xff]  }
  0x5d   :  { %845 = vmatprep.subr.bf16.mxu0 %v1513_v10  ;;  %v1623_v56 = vld [vmem:[#allocation5 + $0x94] ss:$8 sps:$4 sm:$0xff]   ;;  %v1283_v58 = vcombine.high %v1923_v53, %v1923_v53  ;;  %v1551_v59 = vld [vmem:[#allocation5 + $0x210] ss:$8 sps:$4 sm:$0xff]   ;;  %v1556_v62 = vld [vmem:[#allocation5 + $0x224] ss:$8 sps:$4 sm:$0xff]  }
  0x5e   :  { %v1553_v57 = vld [vmem:[#allocation5 + $0x214] ss:$8 sps:$4 sm:$0xff]   ;;  %v1625_v60 = vld [vmem:[#allocation5 + $0x90] ss:$8 sps:$4 sm:$0xff]   ;;  %v1633_v0 = vld [vmem:[#allocation5 + $0xa0] ss:$8 sps:$4 sm:$0xff]  }
  0x5f   :  { %801 = vmatpush1.bf16.msra.mxu1 %v1589_v33  ;;  %v1637_v1 = vld [vmem:[#allocation5 + $0xb4] ss:$8 sps:$4 sm:$0xff]   ;;  %v1639_v3 = vld [vmem:[#allocation5 + $0xb0] ss:$8 sps:$4 sm:$0xff]   ;;  %v81_v4 = vld [vmem:[#allocation2] sm:$0xff] }
  0x60   :  { %846 = vmatpush1.bf16.msra.mxu0 %v1515_v11  ;;  %802 = vmatprep.subr.bf16.mxu1 %v1593_v34  ;;  %v1559_v2 = vld [vmem:[#allocation5 + $0x234] ss:$8 sps:$4 sm:$0xff]   ;;  %v1557_v5 = vld [vmem:[#allocation5 + $0x230] ss:$8 sps:$4 sm:$0xff]   ;;  %v1643_v6 = vld [vmem:[#allocation5 + $0xc4] ss:$8 sps:$4 sm:$0xff]   ;;  %v1279_v7 = vcombine.high %v81_v4, %v81_v4  ;;  %v1278_v27 = vcombine.low %v81_v4, %v81_v4 }
  0x61   :  { %847 = vmatprep.subr.bf16.mxu0 %v1516_v12  ;;  %v1562_v8 = vld [vmem:[#allocation5 + $0x244] ss:$8 sps:$4 sm:$0xff]   ;;  %v1560_v9 = vld [vmem:[#allocation5 + $0x240] ss:$8 sps:$4 sm:$0xff]   ;;  %v1649_v11 = vld [vmem:[#allocation5 + $0xd4] ss:$8 sps:$4 sm:$0xff]  }
  0x62   :  { %826 = vmatprep.mubr.bf16.mxu1 %v1279_v7  ;;  %v1645_v10 = vld [vmem:[#allocation5 + $0xc0] ss:$8 sps:$4 sm:$0xff]   ;;  %v1565_v12 = vld [vmem:[#allocation5 + $0x254] ss:$8 sps:$4 sm:$0xff]   ;;  %v1563_v13 = vld [vmem:[#allocation5 + $0x250] ss:$8 sps:$4 sm:$0xff]  }
  0x63   :  { %803 = vmatpush1.bf16.msra.mxu1 %v1595_v37  ;;  %v1651_v14 = vld [vmem:[#allocation5 + $0xd0] ss:$8 sps:$4 sm:$0xff]   ;;  %v1673_v23 = vld [vmem:[#allocation7 + $0x40] sm:$0xff]   ;;  %v1586_v29 = vld [vmem:[#allocation5 + $0x294] ss:$8 sps:$4 sm:$0xff]  }
  0x64   :  { %848 = vmatpush1.bf16.msra.mxu0 %v1518_v15  ;;  %804 = vmatprep.subr.bf16.mxu1 %v1599_v38  ;;  %v1655_v15 = vld [vmem:[#allocation5 + $0xe4] ss:$8 sps:$4 sm:$0xff]   ;;  %v1663_v21 = vld [vmem:[#allocation5 + $0xf0] ss:$8 sps:$4 sm:$0xff]   ;;  %v1598_v37 = vld [vmem:[#allocation5 + $0x2b4] ss:$8 sps:$4 sm:$0xff]  }
  0x65   :  { %849 = vmatprep.subr.bf16.mxu0 %v1519_v16  ;;  %v1568_v16 = vld [vmem:[#allocation5 + $0x264] ss:$8 sps:$4 sm:$0xff]   ;;  %v1572_v22 = vld [vmem:[#allocation5 + $0x270] ss:$8 sps:$4 sm:$0xff]   ;;  %v1672_v4 = vld [vmem:[#allocation2 + $0x18] ss:$0 sps:$4 sm:$0xff]  }
  0x66   :  { %v1580_v24 = vld [vmem:[#allocation5 + $0x284] ss:$8 sps:$4 sm:$0xff]   ;;  %v1678_v34 = vld [vmem:[#allocation7 + $0x10] sm:$0xff]   ;;  %v1680_v38 = vld [vmem:[#allocation7 + $0x18] sm:$0xff]  }
  0x67   :  { %805 = vmatpush1.bf16.msra.mxu1 %v1601_v41  ;;  %v1676_v30 = vld [vmem:[#allocation7 + $0x8] sm:$0xff]   ;;  %v1685_v7 = vld [vmem:[#allocation7 + $0x70] sm:$0xff]  }
  0x68   :  { %850 = vmatpush1.bf16.msra.mxu0 %v1521_v17  ;;  %806 = vmatprep.subr.bf16.mxu1 %v1605_v42  ;;  %v1566_v17 = vld [vmem:[#allocation5 + $0x260] ss:$8 sps:$4 sm:$0xff]   ;;  %v1592_v33 = vld [vmem:[#allocation5 + $0x2a4] ss:$8 sps:$4 sm:$0xff]  }
  0x69   :  { %851 = vmatprep.subr.bf16.mxu0 %v1522_v18  ;;  %v1574_v18 = vld [vmem:[#allocation5 + $0x274] ss:$8 sps:$4 sm:$0xff]   ;;  %v1604_v41 = vld [vmem:[#allocation5 + $0x2c4] ss:$8 sps:$4 sm:$0xff]  }
  0x6a   :  { %v1682_v42 = vld [vmem:[#allocation7 + $0x20] sm:$0xff]  }
  0x6b   :  { %807 = vmatpush1.bf16.msra.mxu1 %v1607_v45  ;;  %v1608_v45 = vld [vmem:[#allocation5 + $0x2d0] ss:$8 sps:$4 sm:$0xff]  }
  0x6c   :  { %852 = vmatpush1.bf16.msra.mxu0 %v1524_v19  ;;  %808 = vmatprep.subr.bf16.mxu1 %v1611_v46  ;;  %v1657_v19 = vld [vmem:[#allocation5 + $0xe0] ss:$8 sps:$4 sm:$0xff]   ;;  %v1616_v46 = vld [vmem:[#allocation5 + $0x2e4] ss:$8 sps:$4 sm:$0xff]  }
  0x6d   :  { %853 = vmatprep.subr.bf16.mxu0 %v1525_v20  ;;  %v1661_v20 = vld [vmem:[#allocation5 + $0xf4] ss:$8 sps:$4 sm:$0xff]  }
  0x6f   :  { %809 = vmatpush1.bf16.msra.mxu1 %v1613_v49  ;;  %v1620_v49 = vld [vmem:[#allocation5 + $0x2f0] ss:$8 sps:$4 sm:$0xff]  }
  0x70   :  { %854 = vmatpush1.bf16.msra.mxu0 %v1527_v25  ;;  %810 = vmatprep.subr.bf16.mxu1 %v1617_v50  ;;  %v1674_v25 = vld [vmem:[#allocation7] sm:$0xff]  }
  0x71   :  { %855 = vmatprep.subr.bf16.mxu0 %v1528_v26  ;;  %v1578_v26 = vld [vmem:[#allocation5 + $0x280] ss:$8 sps:$4 sm:$0xff]   ;;  %v1630_v50 = vld [vmem:[#allocation5 + $0x304] ss:$8 sps:$4 sm:$0xff]  }
  0x73   :  { %811 = vmatpush1.bf16.msra.mxu1 %v1619_v55  ;;  %v1634_v55 = vld [vmem:[#allocation5 + $0x310] ss:$8 sps:$4 sm:$0xff]  }
  0x74   :  { %856 = vmatpush1.bf16.msra.mxu0 %v1530_v28  ;;  %812 = vmatprep.subr.bf16.mxu1 %v1623_v56  ;;  %v1675_v28 = vld [vmem:[#allocation7 + $0x48] sm:$0xff]   ;;  %v1827_v56 = vmov 0  }
  0x75   :  { %857 = vmatprep.subr.bf16.mxu0 %v1531_v31  ;;  %v1584_v31 = vld [vmem:[#allocation5 + $0x290] ss:$8 sps:$4 sm:$0xff]  }
  0x77   :  { %813 = vmatpush1.bf16.msra.mxu1 %v1625_v60  ;;  %v1646_v60 = vld [vmem:[#allocation5 + $0x330] ss:$8 sps:$4 sm:$0xff]  }
  0x78   :  { %858 = vmatpush1.bf16.msra.mxu0 %v1533_v32  ;;  %814 = vmatprep.subr.bf16.mxu1 %v1631_v61  ;;  %v1677_v32 = vld [vmem:[#allocation7 + $0x50] sm:$0xff]   ;;  %v1654_v61 = vld [vmem:[#allocation5 + $0x344] ss:$8 sps:$4 sm:$0xff]  }
  0x79   :  { %859 = vmatprep.subr.bf16.mxu0 %v1534_v35  ;;  %v1590_v35 = vld [vmem:[#allocation5 + $0x2a0] ss:$8 sps:$4 sm:$0xff]  }
  0x7b   :  { %815 = vmatpush1.bf16.msra.mxu1 %v1633_v0  ;;  %v1666_v0 = vld [vmem:[#allocation5 + $0x364] ss:$8 sps:$4 sm:$0xff]  }
  0x7c   :  { %860 = vmatpush1.bf16.msra.mxu0 %v1536_v36  ;;  %816 = vmatprep.subr.bf16.mxu1 %v1637_v1  ;;  %v1679_v36 = vld [vmem:[#allocation7 + $0x58] sm:$0xff]   ;;  %v1664_v1 = vld [vmem:[#allocation5 + $0x360] ss:$8 sps:$4 sm:$0xff]  }
  0x7d   :  { %861 = vmatprep.subr.bf16.mxu0 %v1537_v39  ;;  %v1596_v39 = vld [vmem:[#allocation5 + $0x2b0] ss:$8 sps:$4 sm:$0xff]  }
  0x7f   :  { %817 = vmatpush1.bf16.msra.mxu1 %v1639_v3  ;;  %v1669_v3 = vld [vmem:[#allocation5 + $0x370] ss:$8 sps:$4 sm:$0xff]  }
  0x80   :  { %862 = vmatpush1.bf16.msra.mxu0 %v1539_v40  ;;  %818 = vmatprep.subr.bf16.mxu1 %v1643_v6  ;;  %v1681_v40 = vld [vmem:[#allocation7 + $0x60] sm:$0xff]   ;;  %v1684_v6 = vld [vmem:[#allocation7 + $0x28] sm:$0xff]  }
  0x81   :  { %863 = vmatprep.subr.bf16.mxu0 %v1540_v43  ;;  %v1602_v43 = vld [vmem:[#allocation5 + $0x2c0] ss:$8 sps:$4 sm:$0xff]  }
  0x83   :  { %819 = vmatpush1.bf16.msra.mxu1 %v1645_v10  ;;  %v1688_v10 = vld [vmem:[#allocation7 + $0x38] sm:$0xff]  }
  0x84   :  { %864 = vmatpush1.bf16.msra.mxu0 %v1542_v44  ;;  %820 = vmatprep.subr.bf16.mxu1 %v1649_v11  ;;  %v1610_v44 = vld [vmem:[#allocation5 + $0x2d4] ss:$8 sps:$4 sm:$0xff]   ;;  %v1828_v11 = vmov 0.0  }
  0x85   :  { %865 = vmatprep.subr.bf16.mxu0 %v1543_v47  ;;  %v1614_v47 = vld [vmem:[#allocation5 + $0x2e0] ss:$8 sps:$4 sm:$0xff]  }
  0x87   :  { %821 = vmatpush1.bf16.msra.mxu1 %v1651_v14 }
  0x88   :  { %866 = vmatpush1.bf16.msra.mxu0 %v1545_v48  ;;  %822 = vmatprep.subr.bf16.mxu1 %v1655_v15  ;;  %v1622_v48 = vld [vmem:[#allocation5 + $0x2f4] ss:$8 sps:$4 sm:$0xff]  }
  0x89   :  { %876 = vmatprep.subr.bf16.mxu0 %v1550_v51  ;;  %v1282_v51 = vcombine.low %v1923_v53, %v1923_v53  ;;  %v1652_v53 = vld [vmem:[#allocation5 + $0x340] ss:$8 sps:$4 sm:$0xff]  }
  0x8b   :  { %868 = vmatmul.mubr.bf16.vlgmr.msra.gmra.mrb[0].mxu0 %v1280_v54  ;;  %823 = vmatpush1.bf16.msra.mxu1 %v1657_v19  ;;  %v1636_v54 = vld [vmem:[#allocation5 + $0x314] ss:$8 sps:$4 sm:$0xff]   ;;  %v197_v19 = vld [vmem:[%s1954_s2] sm:$0x3] }
  0x8c   :  { %877 = vmatpush1.bf16.msra.mxu0 %v1548_v52  ;;  %908 = vmatprep.mubr.bf16.mxu0 %v1283_v58  ;;  %v1628_v52 = vld [vmem:[#allocation5 + $0x300] ss:$8 sps:$4 sm:$0xff]  }
  0x8d   :  { %878 = vmatprep.subr.bf16.mxu0 %v1553_v57  ;;  %824 = vmatprep.subr.bf16.mxu1 %v1661_v20  ;;  %v1642_v57 = vld [vmem:[#allocation5 + $0x324] ss:$8 sps:$4 sm:$0xff]   ;;  %v1640_v58 = vld [vmem:[#allocation5 + $0x320] ss:$8 sps:$4 sm:$0xff]  }
  0x8f   :  { %825 = vmatpush1.bf16.msra.mxu1 %v1663_v21 }
  0x90   :  { %879 = vmatpush1.bf16.msra.mxu0 %v1551_v59  ;;  %1423 = vmatprep.subr.bf16.mxu1 %v1673_v23  ;;  %v1648_v59 = vld [vmem:[#allocation5 + $0x334] ss:$8 sps:$4 sm:$0xff]  }
  0x91   :  { %880 = vmatprep.subr.bf16.mxu0 %v1556_v62  ;;  %v1660_v62 = vld [vmem:[#allocation5 + $0x354] ss:$8 sps:$4 sm:$0xff]  }
  0x92   :  { %827 = vmatmul.mubr.bf16.vlgmr.msra.gmra.mrb[0].mxu1 %v1278_v27 }
  0x93   :  { %1424 = vmatpush3.bf16.msra.mxu1 %v1674_v25 }
  0x94   :  { %881 = vmatpush1.bf16.msra.mxu0 %v1554_v63  ;;  %1425 = vmatprep.subr.bf16.mxu1 %v1675_v28  ;;  %v1658_v63 = vld [vmem:[#allocation5 + $0x350] ss:$8 sps:$4 sm:$0xff]  }
  0x95   :  { %882 = vmatprep.subr.bf16.mxu0 %v1559_v2  ;;  %v1671_v2 = vld [vmem:[#allocation5 + $0x374] ss:$8 sps:$4 sm:$0xff]  }
  0x97   :  { %1426 = vmatpush3.bf16.msra.mxu1 %v1676_v30 }
  0x98   :  { %883 = vmatpush1.bf16.msra.mxu0 %v1557_v5  ;;  %1427 = vmatprep.subr.bf16.mxu1 %v1677_v32  ;;  %v1683_v5 = vld [vmem:[#allocation7 + $0x68] sm:$0xff]  }
  0x99   :  { %884 = vmatprep.subr.bf16.mxu0 %v1562_v8  ;;  %v1686_v8 = vld [vmem:[#allocation7 + $0x30] sm:$0xff]  }
  0x9b   :  { %1428 = vmatpush3.bf16.msra.mxu1 %v1678_v34  ;;  %v1689_v34 = vld [vmem:[#allocation8] sm:$0xff]  }
  0x9c   :  { %885 = vmatpush1.bf16.msra.mxu0 %v1560_v9  ;;  %1429 = vmatprep.subr.bf16.mxu1 %v1679_v36  ;;  %v1687_v9 = vld [vmem:[#allocation7 + $0x78] sm:$0xff]   ;;  %v1690_v36 = vld [vmem:[#allocation8 + $0x8] sm:$0xff]  }
  0x9d   :  { %886 = vmatprep.subr.bf16.mxu0 %v1565_v12 }
  0x9f   :  { %1430 = vmatpush3.bf16.msra.mxu1 %v1680_v38  ;;  %v1692_v38 = vld [vmem:[#allocation8 + $0x18] sm:$0xff]  }
  0xa0   :  { %887 = vmatpush1.bf16.msra.mxu0 %v1563_v13  ;;  %1431 = vmatprep.subr.bf16.mxu1 %v1681_v40  ;;  %v1694_v40 = vld [vmem:[#allocation8 + $0x28] sm:$0xff]  }
  0xa1   :  { %888 = vmatprep.subr.bf16.mxu0 %v1568_v16  ;;  %v199_v16 = vlaneseq }
  0xa3   :  { %1432 = vmatpush3.bf16.msra.mxu1 %v1682_v42  ;;  %v1696_v42 = vld [vmem:[#allocation8 + $0x38] sm:$0xff]  }
  0xa4   :  { %889 = vmatpush1.bf16.msra.mxu0 %v1566_v17  ;;  %1433 = vmatprep.subr.bf16.mxu1 %v1683_v5  ;;  %v200_v17 = vshrl.u32 %v199_v16, 7 }
  0xa5   :  { %890 = vmatprep.subr.bf16.mxu0 %v1574_v18 }
  0xa6   :  { %v201_v18 = vsub.s32 0, %v200_v17  ;;  %v205_v20 = vsub.s32 1, %v200_v17 }
  0xa7   :  { %1434 = vmatpush3.bf16.msra.mxu1 %v1684_v6 }
  0xa8   :  { %891 = vmatpush1.bf16.msra.mxu0 %v1572_v22  ;;  %1435 = vmatprep.subr.bf16.mxu1 %v1685_v7  ;;  %v202_v21 = vrot.slane %v197_v19, %v201_v18  ;;  %v206_v22 = vrot.slane %v197_v19, %v205_v20 }
  0xa9   :  { %892 = vmatprep.subr.bf16.mxu0 %v1580_v24 }
  0xab   :  { %1436 = vmatpush3.bf16.msra.mxu1 %v1686_v8 }
  0xac   :  { %893 = vmatpush1.bf16.msra.mxu0 %v1578_v26  ;;  %1437 = vmatprep.subr.bf16.mxu1 %v1687_v9 }
  0xad   :  { %894 = vmatprep.subr.bf16.mxu0 %v1586_v29 }
  0xaf   :  { %1438 = vmatpush3.bf16.msra.mxu1 %v1688_v10 }
  0xb0   :  { %895 = vmatpush1.bf16.msra.mxu0 %v1584_v31  ;;  %1454 = vmatprep.subr.bf16.mxu1 %v1828_v11 }
  0xb1   :  { %896 = vmatprep.subr.bf16.mxu0 %v1592_v33 }
  0xb4   :  { %897 = vmatpush1.bf16.msra.mxu0 %v1590_v35 }
  0xb5   :  { %898 = vmatprep.subr.bf16.mxu0 %v1598_v37  ;;  %v1691_v37 = vld [vmem:[#allocation8 + $0x10] sm:$0xff]  }
  0xb8   :  { %899 = vmatpush1.bf16.msra.mxu0 %v1596_v39  ;;  %v1693_v39 = vld [vmem:[#allocation8 + $0x20] sm:$0xff]  }
  0xb9   :  { %900 = vmatprep.subr.bf16.mxu0 %v1604_v41  ;;  %v1695_v41 = vld [vmem:[#allocation8 + $0x30] sm:$0xff]  }
  0xbc   :  { %901 = vmatpush1.bf16.msra.mxu0 %v1602_v43 }
  0xbd   :  { %902 = vmatprep.subr.bf16.mxu0 %v1610_v44  ;;  %v1397_v44 = vld [vmem:[%s1956_s4] ss:$0 sm:$0xff]  ;;  %s1830_s4 = smov [#allocation10]  }
  0xbe   :  { %s1267_s30 = sshll.u32 %s1830_s4, 4  ;;  %s1268_s30 = int_to_ptr.vmem [resolvable:$true] %s1267_s30 }
  0xbf   :  { %p1794_p5 = scmp.lt.s32.totalorder %s1268_s30, %s1268_s30 }
  0xc0   :  { %903 = vmatpush1.bf16.msra.mxu0 %v1608_v45 }
  0xc1   :  { %904 = vmatprep.subr.bf16.mxu0 %v1616_v46 }
  0xc4   :  { %905 = vmatpush1.bf16.msra.mxu0 %v1614_v47 }
  0xc5   :  { %906 = vmatprep.subr.bf16.mxu0 %v1622_v48 }
  0xc8   :  { %907 = vmatpush1.bf16.msra.mxu0 %v1620_v49 }
  0xc9   :  { %917 = vmatprep.subr.bf16.mxu0 %v1630_v50 }
  0xcb   :  { %909 = vmatmul.mubr.bf16.vlgmr.msra.gmra.mrb[0].mxu0 %v1282_v51 }
  0xcc   :  { %918 = vmatpush1.bf16.msra.mxu0 %v1628_v52  ;;  %949 = vmatprep.mubr.bf16.mxu0 %v1827_v56  ;;  %v1414_v52 = vld [vmem:[%s1958_s6] ss:$0 sm:$0xff]  ;;  %s1789_s6 = scalar_lea.vmem %s1268_s30, 128 }
  0xcd   :  { %919 = vmatprep.subr.bf16.mxu0 %v1636_v54  ;;  %p1790_p4 = scmp.ne.s32.totalorder %s1268_s30, %s1789_s6  ;;  %p1795_p6 = scmp.lt.s32.totalorder %s1789_s6, %s1789_s6 }
  0xcf   :  { %p1796_p7 = por %p1795_p6, %p1794_p5 }
  0xd0   :  { %920 = vmatpush1.bf16.msra.mxu0 %v1634_v55 }
  0xd1   :  { %921 = vmatprep.subr.bf16.mxu0 %v1642_v57  ;;  %p1797_p8 = pnand %p1796_p7, %p1790_p4 }
  0xd4   :  { %922 = vmatpush1.bf16.msra.mxu0 %v1640_v58 }
  0xd5   :  { %923 = vmatprep.subr.bf16.mxu0 %v1648_v59 }
  0xd8   :  { %924 = vmatpush1.bf16.msra.mxu0 %v1646_v60 }
  0xd9   :  { %925 = vmatprep.subr.bf16.mxu0 %v1654_v61 }
  0xdc   :  { %926 = vmatpush1.bf16.msra.mxu0 %v1652_v53 }
  0xdd   :  { %927 = vmatprep.subr.bf16.mxu0 %v1660_v62 }
  0xe0   :  { %928 = vmatpush1.bf16.msra.mxu0 %v1658_v63 }
  0xe1   :  { %929 = vmatprep.subr.bf16.mxu0 %v1666_v0 }
  0xe4   :  { %930 = vmatpush1.bf16.msra.mxu0 %v1664_v1 }
  0xe5   :  { %931 = vmatprep.subr.bf16.mxu0 %v1671_v2 }
  0xe8   :  { %932 = vmatpush1.bf16.msra.mxu0 %v1669_v3 }
  0xeb   :  { %950 = vmatmul.mubr.bf16.vlgmr.msra.gmra.mrb[0].mxu0 %v1672_v4 }
 0x165   :  { %v828_v12 = vpop.f32.mrb[0].mxu1 }
 0x166   :  { %v830_v13 = vpop.f32.mrb[1].mxu1  ;;  %v829_v23 = vadd.f32 %v828_v12, %v202_v21 }
 0x167   :  { %v832_v14 = vpop.f32.mrb[2].mxu1  ;;  %v831_v24 = vadd.f32 %v830_v13, %v206_v22 }
 0x168   :  { %v833_v15 = vpop.f32.mrb[3].mxu1 }
 0x1be   :  { %v951_v25 = vpop.f32.mrb[0].mxu0 }
 0x1bf   :  { %v1475_v26 = vadd.f32 %v951_v25, %v829_v23  ;;  %v953_v27 = vpop.f32.mrb[1].mxu0 }
 0x1c0   :  { %v1477_v28 = vadd.f32 %v953_v27, %v831_v24  ;;  %v955_v29 = vpop.f32.mrb[2].mxu0 }
 0x1c1   :  { %v958_v30 = vmax.f32 %v1475_v26, 0.0  ;;  %v956_v31 = vpop.f32.mrb[3].mxu0 }
 0x1c2   :  { %v959_v32 = vmax.f32 %v1477_v28, 0.0 }
 0x1c3   :  { %v960_v35 = vpack.c.bf16 %v958_v30, %v958_v30 }
 0x1c4   :  { %v961_v33 = vpack.c.bf16 %v959_v32, %v959_v32 }
 0x1c6   :  { %1129 = vmatprep.mubr.bf16.mxu1 %v961_v33 }
 0x1c7   :  { %1130 = vmatmul.mubr.bf16.vlgmr.msra.gmra.mrb[4].mxu1 %v960_v35 }
 0x1c8   :  { %1455 = vmatpush3.bf16.msra.mxu1 %v1689_v34  ;;  %1470 = vmatprep.mubr.msk.bf16.mxu1 %vm1829_vm0, %v1828_v11 }
 0x1c9   :  { %1456 = vmatprep.subr.bf16.mxu1 %v1828_v11 }
 0x1cc   :  { %1457 = vmatpush3.bf16.msra.mxu1 %v1690_v36 }
 0x1cd   :  { %1458 = vmatprep.subr.bf16.mxu1 %v1828_v11 }
 0x1d0   :  { %1459 = vmatpush3.bf16.msra.mxu1 %v1691_v37 }
 0x1d1   :  { %1460 = vmatprep.subr.bf16.mxu1 %v1828_v11 }
 0x1d4   :  { %1461 = vmatpush3.bf16.msra.mxu1 %v1692_v38 }
 0x1d5   :  { %1462 = vmatprep.subr.bf16.mxu1 %v1828_v11 }
 0x1d8   :  { %1463 = vmatpush3.bf16.msra.mxu1 %v1693_v39 }
 0x1d9   :  { %1464 = vmatprep.subr.bf16.mxu1 %v1828_v11 }
 0x1dc   :  { %1465 = vmatpush3.bf16.msra.mxu1 %v1694_v40 }
 0x1dd   :  { %1466 = vmatprep.subr.bf16.mxu1 %v1828_v11 }
 0x1e0   :  { %1467 = vmatpush3.bf16.msra.mxu1 %v1695_v41 }
 0x1e1   :  { %1468 = vmatprep.subr.bf16.mxu1 %v1828_v11 }
 0x1e4   :  { %1469 = vmatpush3.bf16.msra.mxu1 %v1696_v42 }
 0x29a   :  { %v1439_v43 = vpop.f32.mrb[4].mxu1 }
 0x29b   :  { %v1440_v45 = vpop.f32.mrb[5].mxu1 }
 0x29c   :  { %v1441_v46 = vadd.f32 %v1440_v45, %v1439_v43  ;;  %v1442_v47 = vpop.f32.mrb[6].mxu1 }
 0x29d   :  { %v1443_v48 = vpop.f32.mrb[7].mxu1 }
 0x29e   :  { %v1132_v49 = vadd.f32 %v1441_v46, %v1397_v44 }
 0x2a0   :  { %v1137_v50 = vmax.f32 %v1132_v49, 0.0 }
 0x2a2   :  { %v1138_v51 = vpack.c.bf16 %v1137_v50, %v1137_v50 }
 0x2a4   :  { %1471 = vmatmul.mubr.bf16.vlgmr.msra.gmra.mrb[8].mxu1 %v1138_v51 }
 0x377   :  { %v1244_v54 = vpop.f32.mrb[8].mxu1 }
 0x378   :  { %v1245_v55 = vadd.f32 %v1414_v52, %v1244_v54  ;;  %v1472_v56 = vpop.f32.mrb[9].mxu1 }
 0x379   :  { %v1247_v57 = vpop.f32.mrb[10].mxu1 }
 0x37a   :  { %1250 = vmax.xlane.f32.xlu0 %v1245_v55  ;;  %v1473_v58 = vpop.f32.mrb[11].mxu1 }
 0x407   :  { %v1251_v59 = vpop.xlane.xlu0 %1250 }
 0x408   :  { %v1252_v60 = vsub.f32 %v1245_v55, %v1251_v59 }
 0x40a   :  { %v1253_v61 = vmul.f32 1.442695, %v1252_v60 }
 0x40c   :  { %1697 = vpow2.f32 %v1253_v61 }
 0x416   :  { %v1698_v53 = vpop.eup %1697 }
 0x417   :  { %1255 = vadd.xlane.f32.xlu0 %v1698_v53 }
 0x4a4   :  { %v1256_v62 = vpop.xlane.xlu0 %1255 }
 0x4a5   :  { %1699 = vlog2.f32 %v1256_v62 }
 0x4af   :  { %v1700_v63 = vpop.eup %1699 }
 0x4b0   :  { %v1258_v0 = vmul.f32 0.6931472, %v1700_v63 }
 0x4b2   :  { %v1259_v1 = vsub.f32 %v1252_v60, %v1258_v0 }
 0x4b4   :  { %1260 = vst [vmem:[#allocation10] sm:$0xff] %v1259_v1 }
 0x4b5   :  { %1800 = shalt.err (!%p1797_p8)
}
 0x4b6   :  { %s1801_s10 = scalar_lea.hbm %s1959_s7, 128 }
 0x4b7   :  { %p1802_p9 = scmp.ne.s32.totalorder %s1959_s7, %s1801_s10  ;;  %p1805_p10 = scmp.lt.u32.totalorder %s1801_s10, %s1959_s7 }
 0x4b9   :  { %p1807_p11 = pnand %p1805_p10, %p1802_p9 }
 0x4bb   :  { %1810 = shalt.err (!%p1807_p11)
}
 0x4bc   :  { %1270 = dma.vmem_to_hbm [thread:$0]  %s1268_s30, 128, %s1959_s7, [#allocation4]  }
 0x4bd   :  { %1817 = dma.done.wait [#allocation4], 128  }
 0x4be   :  { %1818 = vsyncadd [#allocation4], 4294967168 }
 0x4bf   :  { %1274 = vsyncpa [#allocation3], 1 }
 0x4c0   :  { %1275 = vsyncpa [#allocation6], 1 }
 0x4c1   :  { %1276 = vsyncpa [#allocation9], 1 }
 0x4c2   :  { %1277 = vsyncpa [#allocation4], 1 }

</bundles_post_ra>
